<compile_context>
chip_gen: v7x
topology: tpu7x:2x2x1
jax: 0.10.0
libtpu: 0.0.40
codegen_flags: <defaults>
</compile_context>

<pallas_src>
import functools

import jax
import jax.numpy as jnp
import numpy as np
from jax.experimental import pallas as pl
from jax.experimental.pallas import tpu as pltpu


def _round_up(x, m):
    return (x + m - 1) // m * m


def classifier_kernel(xp_ref, we_ref, be_ref, wp_ref, bp_ref, wh_ref, bh_ref,
                      out_ref, acc_ref, *, num_patches, padded_patches):
    """Grid step (batch-block b, patch-block q).

    Accumulates the per-batch patch-embedding sum across the patch axis in
    acc_ref; on the last patch step finishes mean-pool, projection,
    L2-normalize and the classification head, writing a lane-dense logits tile.
    """
    q_idx = pl.program_id(1)
    TB, TP, K = xp_ref.shape
    D = acc_ref.shape[-1]

    @pl.when(q_idx == 0)
    def _():
        acc_ref[...] = jnp.zeros_like(acc_ref)

    # Patch embedding on the MXU (bf16 in, f32 accumulate) + bias + ReLU.
    x2 = xp_ref[...].reshape(TB * TP, K)
    h = jnp.dot(x2, we_ref[...], preferred_element_type=jnp.float32)
    h = jnp.maximum(h + be_ref[...], 0.0)                       # [TB*TP, D] f32

    # Running per-batch sum over patches (reduction axis of the grid).
    acc_ref[...] += h.reshape(TB, TP, D).sum(axis=1)

    @pl.when(q_idx == pl.num_programs(1) - 1)
    def _():
        pooled = acc_ref[...]
        if padded_patches:
            # Zero-padded patch rows contributed exactly relu(b_embed) each
            # (0 @ W == 0 exactly in f32), so subtract that leak once instead
            # of masking every step.
            pooled = pooled - float(padded_patches) * jnp.maximum(be_ref[...], 0.0)
        pooled = pooled * (1.0 / float(num_patches))             # mean pool

        # Projection + head are tiny -> keep them in f32 for parity.
        z = jnp.dot(pooled, wp_ref[...],
                    preferred_element_type=jnp.float32) + bp_ref[...]
        # torch.nn.functional.normalize semantics: x / max(||x||, eps), eps=1e-12
        inv_norm = jax.lax.rsqrt(
            jnp.maximum(jnp.sum(z * z, axis=-1, keepdims=True), 1e-24))
        zn = z * inv_norm
        logits = jnp.dot(zn, wh_ref[...],
                         preferred_element_type=jnp.float32) + bh_ref[...]
        out_ref[...] = logits.astype(out_ref.dtype)


@functools.partial(jax.jit, static_argnames=("patch",))
def image_classifier_forward(x, params, patch):
    """x: [B, C, H, W] (NCHW).  Returns logits [B, num_classes] (f32)."""
    B, C, H, W = x.shape
    p = patch
    Ph, Pw = H // p, W // p
    P = Ph * Pw
    K = C * p * p

    we, be = params["w_embed"], params["b_embed"]
    wp, bp = params["w_proj"], params["b_proj"]
    wh, bh = params["w_head"], params["b_head"]
    D, F, NC = we.shape[1], wp.shape[1], wh.shape[1]

    # Lane-aligned padded sizes on the matmul output dims (kept lane-dense).
    D_pad = _round_up(D, 128)
    F_pad = _round_up(F, 128)
    NC_pad = _round_up(NC, 128)

    # ---- tile selection -----------------------------------------------------
    # Batch tile: full batch when tiny; otherwise 8 (or 16 for big batches) so
    # there are >= 2 batch blocks whenever B >= 16 and both TensorCores get
    # work on v7x megacore.
    if B <= 8:
        TB = B
    elif B <= 32:
        TB = 8
    else:
        TB = 16
    B_pad = _round_up(B, TB)

    # Patch tile: as big as comfortably fits VMEM (per-step overhead ~0.35us
    # favours few, large steps); padding (and its correction) only when needed.
    if P <= 256:
        TP, P_pad = P, P
    else:
        TP = 256
        P_pad = _round_up(P, TP)
    n_pad_patches = P_pad - P

    # ---- patch extraction (single fused transpose + bf16 cast) -------------
    # [B, C, H, W] -> [B, P, K], channel-major within a patch (Conv2d layout).
    xp = x.reshape(B, C, Ph, p, Pw, p)
    xp = jnp.transpose(xp, (0, 2, 4, 1, 3, 5)).reshape(B, P, K)
    xp = xp.astype(jnp.bfloat16)
    if B_pad != B or P_pad != P:
        xp = jnp.pad(xp, ((0, B_pad - B), (0, P_pad - P), (0, 0)))

    # Weights: the big patch-embed matmul runs in bf16 on the MXU; the tiny
    # projection / head matmuls stay f32.  K is left unpadded (full-dim block).
    we_p = jnp.pad(we, ((0, 0), (0, D_pad - D))).astype(jnp.bfloat16)
    wp_p = jnp.pad(wp, ((0, D_pad - D), (0, F_pad - F))).astype(jnp.float32)
    wh_p = jnp.pad(wh, ((0, F_pad - F), (0, NC_pad - NC))).astype(jnp.float32)
    be_p = jnp.pad(be.reshape(1, -1), ((0, 0), (0, D_pad - D))).astype(jnp.float32)
    bp_p = jnp.pad(bp.reshape(1, -1), ((0, 0), (0, F_pad - F))).astype(jnp.float32)
    bh_p = jnp.pad(bh.reshape(1, -1), ((0, 0), (0, NC_pad - NC))).astype(jnp.float32)

    # ---- explicit VMEM budget (v7x has 64 MiB physical, 32 MiB scoped) -----
    xp_tile = TB * TP * K * 2                     # bf16, double-buffered
    h_tile = TB * TP * D_pad * 4                  # f32 intermediate
    w_bytes = (we_p.size * 2 + wp_p.size * 4 + wh_p.size * 4
               + (D_pad + F_pad + NC_pad) * 4)
    out_tile = TB * NC_pad * 4
    acc_tile = TB * D_pad * 4
    est = 2 * xp_tile + h_tile + 2 * w_bytes + 2 * out_tile + acc_tile
    vmem_limit = int(min(max(2 * est, 32 * 2**20), 64 * 2**20))

    def const(shape):
        # Constant blocks: DMA'd once (index_map never changes).
        # TODO(synk): single-buffer these (pipeline_mode=pl.Buffered(1)) to
        # halve their VMEM once that path is verified on this jax build.
        return pl.BlockSpec(shape, lambda b, q: (0,) * len(shape))

    grid = (B_pad // TB, P_pad // TP)   # patch (reduction) axis innermost

    # TODO(synk): for very large num_classes, block the head over NC instead
    # of keeping the full (F_pad, NC_pad) tile resident for the whole grid.
    out = pl.pallas_call(
        functools.partial(classifier_kernel, num_patches=P,
                          padded_patches=n_pad_patches),
        out_shape=jax.ShapeDtypeStruct((B_pad, NC_pad), jnp.float32),
        grid_spec=pltpu.PrefetchScalarGridSpec(
            num_scalar_prefetch=0,
            grid=grid,
            in_specs=[
                pl.BlockSpec((TB, TP, K), lambda b, q: (b, q, 0)),  # patches
                const((K, D_pad)),       # w_embed
                const((1, D_pad)),       # b_embed
                const((D_pad, F_pad)),   # w_proj
                const((1, F_pad)),       # b_proj
                const((F_pad, NC_pad)),  # w_head
                const((1, NC_pad)),      # b_head
            ],
            out_specs=pl.BlockSpec((TB, NC_pad), lambda b, q: (b, 0)),
            scratch_shapes=[pltpu.VMEM((TB, D_pad), jnp.float32)],
        ),
        compiler_params=pltpu.CompilerParams(
            dimension_semantics=("parallel", "arbitrary"),
            vmem_limit_bytes=vmem_limit),
        cost_estimate=pl.CostEstimate(
            flops=2 * B * P * K * D + 2 * B * D * F + 2 * B * F * NC,
            transcendentals=B,
            bytes_accessed=(x.size * 4 + xp.size * 2 + we_p.size * 2
                            + wp_p.size * 4 + wh_p.size * 4
                            + B_pad * NC_pad * 4),
        ),
    )(xp, we_p, be_p, wp_p, bp_p, wh_p, bh_p)

    return out[:B, :NC]


def init_params(key, *, C, patch, embed_dim, feat_dim, num_classes):
    K = C * patch * patch
    k1, k2, k3 = jax.random.split(key, 3)
    return {
        "w_embed": jax.random.normal(k1, (K, embed_dim), jnp.float32) * 0.02,
        "b_embed": jnp.zeros((embed_dim,), jnp.float32),
        "w_proj": jax.random.normal(k2, (embed_dim, feat_dim), jnp.float32) * 0.02,
        "b_proj": jnp.zeros((feat_dim,), jnp.float32),
        "w_head": jax.random.normal(k3, (feat_dim, num_classes), jnp.float32) * 0.02,
        "b_head": jnp.zeros((num_classes,), jnp.float32),
    }


def _reference_forward(x, params, patch):
    """Pure-JAX f32 reference with the same semantics (for a sanity check)."""
    B, C, H, W = x.shape
    p = patch
    Ph, Pw = H // p, W // p
    P = Ph * Pw
    xp = x.reshape(B, C, Ph, p, Pw, p)
    xp = jnp.transpose(xp, (0, 2, 4, 1, 3, 5)).reshape(B, P, C * p * p)
    h = jnp.maximum(jnp.einsum("bpk,kd->bpd", xp, params["w_embed"])
                    + params["b_embed"], 0.0)
    pooled = h.mean(axis=1)
    z = pooled @ params["w_proj"] + params["b_proj"]
    zn = z / jnp.maximum(jnp.linalg.norm(z, axis=-1, keepdims=True), 1e-12)
    return zn @ params["w_head"] + params["b_head"]


if __name__ == "__main__":
    key = jax.random.PRNGKey(0)
    kx, kp = jax.random.split(key)

    B, C, H, W = 2, 4, 16, 16
    patch = 8
    embed_dim, feat_dim, num_classes = 64, 32, 16

    x = jax.random.normal(kx, (B, C, H, W), jnp.float32)
    params = init_params(kp, C=C, patch=patch, embed_dim=embed_dim,
                         feat_dim=feat_dim, num_classes=num_classes)

    logits = image_classifier_forward(x, params, patch)
    jax.block_until_ready(logits)
    assert logits.shape == (B, num_classes)

    # Tolerance accounts for the bf16 patch-embed matmul (f32 accumulation);
    # projection/head are f32 so parity is tighter than before.
    ref = _reference_forward(x, params, patch)
    np.testing.assert_allclose(np.asarray(logits), np.asarray(ref),
                               rtol=5e-2, atol=2e-2)
    print("KERNEL_OK")
</pallas_src>

<mosaic_0001>
module attributes {stable_mosaic.version = 11 : i64} {
  func.func @classifier_kernel(%arg0: i32, %arg1: i32, %arg2: memref<2x4x256xbf16, #tpu.memory_space<vmem>>, %arg3: memref<256x128xbf16, #tpu.memory_space<vmem>>, %arg4: memref<1x128xf32, #tpu.memory_space<vmem>>, %arg5: memref<128x128xf32, #tpu.memory_space<vmem>>, %arg6: memref<1x128xf32, #tpu.memory_space<vmem>>, %arg7: memref<128x128xf32, #tpu.memory_space<vmem>>, %arg8: memref<1x128xf32, #tpu.memory_space<vmem>>, %arg9: memref<2x128xf32, #tpu.memory_space<vmem>>, %arg10: memref<2x128xf32, #tpu.memory_space<vmem>>) attributes {dimension_semantics = [#tpu.dimension_semantics<parallel>, #tpu.dimension_semantics<arbitrary>], iteration_bounds = array<i64: 1, 1>, scalar_prefetch = 0 : i64, scratch_operands = 1 : i64, tpu.core_type = #tpu.core_type<tc>, window_params = [{transform_indices = @transform_0, window_bounds = array<i64: 2, 4, 256>}, {pipeline_mode = #tpu.pipeline_mode<synchronous>, transform_indices = @transform_1, window_bounds = array<i64: 256, 128>}, {pipeline_mode = #tpu.pipeline_mode<synchronous>, transform_indices = @transform_2, window_bounds = array<i64: 1, 128>}, {pipeline_mode = #tpu.pipeline_mode<synchronous>, transform_indices = @transform_3, window_bounds = array<i64: 128, 128>}, {pipeline_mode = #tpu.pipeline_mode<synchronous>, transform_indices = @transform_4, window_bounds = array<i64: 1, 128>}, {pipeline_mode = #tpu.pipeline_mode<synchronous>, transform_indices = @transform_5, window_bounds = array<i64: 128, 128>}, {pipeline_mode = #tpu.pipeline_mode<synchronous>, transform_indices = @transform_6, window_bounds = array<i64: 1, 128>}, {transform_indices = @transform_7, window_bounds = array<i64: 2, 128>}]} {
    %c0_i32 = arith.constant 0 : i32
    %0 = arith.cmpi eq, %arg1, %c0_i32 : i32
    %1 = arith.extui %0 : i1 to i32
    %c0_i32_0 = arith.constant 0 : i32
    %2 = arith.cmpi ne, %1, %c0_i32_0 : i32
    scf.if %2 {
      %cst_15 = arith.constant 0.000000e+00 : f32
      %20 = vector.broadcast %cst_15 : f32 to vector<2x128xf32>
      %c0_16 = arith.constant 0 : index
      %c0_17 = arith.constant 0 : index
      %21 = vector.load %arg10[%c0_16, %c0_17] : memref<2x128xf32, #tpu.memory_space<vmem>>, vector<2x128xf32>
      tpu.vector_store %arg10[%c0_16, %c0_17], %20 {strides = array<i32>} : memref<2x128xf32, #tpu.memory_space<vmem>>, vector<2x128xf32>,
    } else {
    }
    %c0 = arith.constant 0 : index
    %c0_1 = arith.constant 0 : index
    %c0_2 = arith.constant 0 : index
    %3 = vector.load %arg2[%c0, %c0_1, %c0_2] : memref<2x4x256xbf16, #tpu.memory_space<vmem>>, vector<2x4x256xbf16>
    %4 = vector.shape_cast %3 : vector<2x4x256xbf16> to vector<8x256xbf16>
    %c0_3 = arith.constant 0 : index
    %c0_4 = arith.constant 0 : index
    %5 = vector.load %arg3[%c0_3, %c0_4] : memref<256x128xbf16, #tpu.memory_space<vmem>>, vector<256x128xbf16>
    %cst = arith.constant dense<0.000000e+00> : vector<8x128xf32>
    %6 = tpu.matmul %4, %5, %cst {dimension_numbers = #tpu.dot_dimension_numbers<[1], [0], [0], [1], [0, 0, 1, 1], [], []>} : vector<8x256xbf16>, vector<256x128xbf16>, vector<8x128xf32> -> vector<8x128xf32>
    %c0_5 = arith.constant 0 : index
    %c0_6 = arith.constant 0 : index
    %7 = vector.load %arg4[%c0_5, %c0_6] : memref<1x128xf32, #tpu.memory_space<vmem>>, vector<1x128xf32>
    %8 = vector.broadcast %7 : vector<1x128xf32> to vector<8x128xf32>
    %9 = arith.addf %6, %8 : vector<8x128xf32>
    %cst_7 = arith.constant 0.000000e+00 : f32
    %10 = vector.broadcast %cst_7 : f32 to vector<8x128xf32>
    %11 = arith.maximumf %9, %10 : vector<8x128xf32>
    %c0_8 = arith.constant 0 : index
    %c0_9 = arith.constant 0 : index
    %12 = vector.load %arg10[%c0_8, %c0_9] : memref<2x128xf32, #tpu.memory_space<vmem>>, vector<2x128xf32>
    %13 = vector.shape_cast %11 : vector<8x128xf32> to vector<2x4x128xf32>
    %cst_10 = arith.constant dense<0.000000e+00> : vector<2x128xf32>
    %14 = vector.multi_reduction <add>, %13, %cst_10 [1] : vector<2x4x128xf32> to vector<2x128xf32>
    %15 = arith.addf %12, %14 : vector<2x128xf32>
    %c0_11 = arith.constant 0 : index
    %c0_12 = arith.constant 0 : index
    %16 = vector.load %arg10[%c0_11, %c0_12] : memref<2x128xf32, #tpu.memory_space<vmem>>, vector<2x128xf32>
    tpu.vector_store %arg10[%c0_11, %c0_12], %15 {strides = array<i32>} : memref<2x128xf32, #tpu.memory_space<vmem>>, vector<2x128xf32>,
    %c0_i32_13 = arith.constant 0 : i32
    %17 = arith.cmpi eq, %arg1, %c0_i32_13 : i32
    %18 = arith.extui %17 : i1 to i32
    %c0_i32_14 = arith.constant 0 : i32
    %19 = arith.cmpi ne, %18, %c0_i32_14 : i32
    scf.if %19 {
      %c0_15 = arith.constant 0 : index
      %c0_16 = arith.constant 0 : index
      %20 = vector.load %arg10[%c0_15, %c0_16] : memref<2x128xf32, #tpu.memory_space<vmem>>, vector<2x128xf32>
      %cst_17 = arith.constant 2.500000e-01 : f32
      %21 = vector.broadcast %cst_17 : f32 to vector<2x128xf32>
      %22 = arith.mulf %20, %21 : vector<2x128xf32>
      %c0_18 = arith.constant 0 : index
      %c0_19 = arith.constant 0 : index
      %23 = vector.load %arg5[%c0_18, %c0_19] : memref<128x128xf32, #tpu.memory_space<vmem>>, vector<128x128xf32>
      %cst_20 = arith.constant dense<0.000000e+00> : vector<2x128xf32>
      %24 = tpu.matmul %22, %23, %cst_20 {dimension_numbers = #tpu.dot_dimension_numbers<[1], [0], [0], [1], [0, 0, 1, 1], [], []>} : vector<2x128xf32>, vector<128x128xf32>, vector<2x128xf32> -> vector<2x128xf32>
      %c0_21 = arith.constant 0 : index
      %c0_22 = arith.constant 0 : index
      %25 = vector.load %arg6[%c0_21, %c0_22] : memref<1x128xf32, #tpu.memory_space<vmem>>, vector<1x128xf32>
      %26 = vector.broadcast %25 : vector<1x128xf32> to vector<2x128xf32>
      %27 = arith.addf %24, %26 : vector<2x128xf32>
      %28 = arith.mulf %27, %27 : vector<2x128xf32>
      %cst_23 = arith.constant dense<0.000000e+00> : vector<2xf32>
      %29 = vector.multi_reduction <add>, %28, %cst_23 [1] : vector<2x128xf32> to vector<2xf32>
      %30 = vector.shape_cast %29 : vector<2xf32> to vector<2x1xf32>
      %cst_24 = arith.constant 1.000000e-24 : f32
      %31 = vector.broadcast %cst_24 : f32 to vector<2x1xf32>
      %32 = arith.maximumf %30, %31 : vector<2x1xf32>
      %33 = math.rsqrt %32 : vector<2x1xf32>
      %34 = vector.broadcast %33 : vector<2x1xf32> to vector<2x128xf32>
      %35 = arith.mulf %27, %34 : vector<2x128xf32>
      %c0_25 = arith.constant 0 : index
      %c0_26 = arith.constant 0 : index
      %36 = vector.load %arg7[%c0_25, %c0_26] : memref<128x128xf32, #tpu.memory_space<vmem>>, vector<128x128xf32>
      %cst_27 = arith.constant dense<0.000000e+00> : vector<2x128xf32>
      %37 = tpu.matmul %35, %36, %cst_27 {dimension_numbers = #tpu.dot_dimension_numbers<[1], [0], [0], [1], [0, 0, 1, 1], [], []>} : vector<2x128xf32>, vector<128x128xf32>, vector<2x128xf32> -> vector<2x128xf32>
      %c0_28 = arith.constant 0 : index
      %c0_29 = arith.constant 0 : index
      %38 = vector.load %arg8[%c0_28, %c0_29] : memref<1x128xf32, #tpu.memory_space<vmem>>, vector<1x128xf32>
      %39 = vector.broadcast %38 : vector<1x128xf32> to vector<2x128xf32>
      %40 = arith.addf %37, %39 : vector<2x128xf32>
      %c0_30 = arith.constant 0 : index
      %c0_31 = arith.constant 0 : index
      %41 = vector.load %arg9[%c0_30, %c0_31] : memref<2x128xf32, #tpu.memory_space<vmem>>, vector<2x128xf32>
      tpu.vector_store %arg9[%c0_30, %c0_31], %40 {strides = array<i32>} : memref<2x128xf32, #tpu.memory_space<vmem>>, vector<2x128xf32>,
    } else {
    }
    return
  }
  func.func @transform_0(%arg0: i32, %arg1: i32) -> (i32, i32, i32) {
    %c0_i32 = arith.constant 0 : i32
    %c0_i32_0 = arith.constant 0 : i32
    return %arg0, %arg1, %c0_i32 : i32, i32, i32
  }
  func.func @transform_1(%arg0: i32, %arg1: i32) -> (i32, i32) {
    %c0_i32 = arith.constant 0 : i32
    %c0_i32_0 = arith.constant 0 : i32
    %c0_i32_1 = arith.constant 0 : i32
    return %c0_i32, %c0_i32_0 : i32, i32
  }
  func.func @transform_2(%arg0: i32, %arg1: i32) -> (i32, i32) {
    %c0_i32 = arith.constant 0 : i32
    %c0_i32_0 = arith.constant 0 : i32
    %c0_i32_1 = arith.constant 0 : i32
    return %c0_i32, %c0_i32_0 : i32, i32
  }
  func.func @transform_3(%arg0: i32, %arg1: i32) -> (i32, i32) {
    %c0_i32 = arith.constant 0 : i32
    %c0_i32_0 = arith.constant 0 : i32
    %c0_i32_1 = arith.constant 0 : i32
    return %c0_i32, %c0_i32_0 : i32, i32
  }
  func.func @transform_4(%arg0: i32, %arg1: i32) -> (i32, i32) {
    %c0_i32 = arith.constant 0 : i32
    %c0_i32_0 = arith.constant 0 : i32
    %c0_i32_1 = arith.constant 0 : i32
    return %c0_i32, %c0_i32_0 : i32, i32
  }
  func.func @transform_5(%arg0: i32, %arg1: i32) -> (i32, i32) {
    %c0_i32 = arith.constant 0 : i32
    %c0_i32_0 = arith.constant 0 : i32
    %c0_i32_1 = arith.constant 0 : i32
    return %c0_i32, %c0_i32_0 : i32, i32
  }
  func.func @transform_6(%arg0: i32, %arg1: i32) -> (i32, i32) {
    %c0_i32 = arith.constant 0 : i32
    %c0_i32_0 = arith.constant 0 : i32
    %c0_i32_1 = arith.constant 0 : i32
    return %c0_i32, %c0_i32_0 : i32, i32
  }
  func.func @transform_7(%arg0: i32, %arg1: i32) -> (i32, i32) {
    %c0_i32 = arith.constant 0 : i32
    %c0_i32_0 = arith.constant 0 : i32
    return %arg0, %c0_i32 : i32, i32
  }
}

</mosaic_0001>

<bundles_post_ra>
// kernel: image_classifier_forward.1
= control target key start
LH: loop header
LB: loop body
LE: loop exit
PB: predicated region body
PF: predicated region fallthrough
CT: control target
= control target key end

     0   :  { %s934_s0 = inlined_call_operand.vmem [shape: bf16[2,4,256], index: 0, kind: input, shape index: {}]   ;;  %s935_s1 = inlined_call_operand.vmem [shape: bf16[256,128], index: 1, kind: input, shape index: {}]   ;;  %s936_s2 = inlined_call_operand.vmem [shape: f32[1,128], index: 2, kind: input, shape index: {}]   ;;  %s937_s3 = inlined_call_operand.vmem [shape: f32[128,128], index: 3, kind: input, shape index: {}]   ;;  %s938_s4 = inlined_call_operand.vmem [shape: f32[1,128], index: 4, kind: input, shape index: {}]   ;;  %s939_s5 = inlined_call_operand.vmem [shape: f32[128,128], index: 5, kind: input, shape index: {}]   ;;  %s940_s6 = inlined_call_operand.vmem [shape: f32[1,128], index: 6, kind: input, shape index: {}]   ;;  %s941_s7 = inlined_call_operand.hbm [shape: f32[2,128], index: 7, kind: output, shape index: {}]  }
   0x1   :  { %v662_v0 = vld [vmem:[%s935_s1 + $0x40] sm:$0xff]   ;;  %v664_v2 = vld [vmem:[%s935_s1 + $0x48] sm:$0xff]   ;;  %v666_v4 = vld [vmem:[%s935_s1 + $0x50] sm:$0xff]  }
   0x2   :  { %v663_v1 = vld [vmem:[%s935_s1] sm:$0xff]   ;;  %483 = vmatprep.subr.bf16.mxu0 %v662_v0  ;;  %v665_v3 = vld [vmem:[%s935_s1 + $0x8] sm:$0xff]   ;;  %v667_v5 = vld [vmem:[%s935_s1 + $0x10] sm:$0xff]  }
   0x3   :  { %484 = vmatpush3.bf16.msra.mxu0 %v663_v1  ;;  %v668_v6 = vld [vmem:[%s935_s1 + $0x58] sm:$0xff]   ;;  %v670_v8 = vld [vmem:[%s935_s1 + $0x60] sm:$0xff]   ;;  %v672_v10 = vld [vmem:[%s935_s1 + $0x68] sm:$0xff]  }
   0x4   :  { %485 = vmatprep.subr.bf16.mxu0 %v664_v2  ;;  %v669_v7 = vld [vmem:[%s935_s1 + $0x18] sm:$0xff]   ;;  %v671_v9 = vld [vmem:[%s935_s1 + $0x20] sm:$0xff]  }
   0x7   :  { %486 = vmatpush3.bf16.msra.mxu0 %v665_v3 }
   0x8   :  { %487 = vmatprep.subr.bf16.mxu0 %v666_v4 }
   0xb   :  { %488 = vmatpush3.bf16.msra.mxu0 %v667_v5 }
   0xc   :  { %489 = vmatprep.subr.bf16.mxu0 %v668_v6 }
   0xf   :  { %490 = vmatpush3.bf16.msra.mxu0 %v669_v7 }
  0x10   :  { %491 = vmatprep.subr.bf16.mxu0 %v670_v8 }
  0x11   :  { %12 = vsyncpa [#allocation4], 0  ;;  %v673_v11 = vld [vmem:[%s935_s1 + $0x28] sm:$0xff]   ;;  %v674_v12 = vld [vmem:[%s935_s1 + $0x70] sm:$0xff]   ;;  %v706_v21 = vmov 0.0|0.0   ;;  %v707_v31 = vmov 0.0  }
  0x12   :  { %v681_v13 = vld.sshfl [vmem:[%s934_s0] sm:$0xff pattern:$0x76325410]  ;;  %v675_v14 = vld [vmem:[%s935_s1 + $0x30] sm:$0xff]   ;;  %v676_v15 = vld [vmem:[%s935_s1 + $0x78] sm:$0xff]   ;;  %609 = vmatprep.subr.bf16.mxu1 %v706_v21  ;;  %vm708_vm0 = vmmov 0  }
  0x13   :  { %492 = vmatpush3.bf16.msra.mxu0 %v671_v9  ;;  %v84_v16 = vcombine.high %v681_v13, %v681_v13  ;;  %v677_v17 = vld [vmem:[%s935_s1 + $0x38] sm:$0xff]   ;;  %v255_v18 = vld [vmem:[%s937_s3] sm:$0xff]  ;;  %v256_v19 = vld [vmem:[%s937_s3 + $0x8] sm:$0xff]  ;;  %32 = vst [vmem:[#allocation2] sm:$0x3] %v707_v31  ;;  %571 = vmatprep.mubr.msk.f32.mxu1 %vm708_vm0, %v707_v31  ;;  %vm228_vm1 = vcmask 1043456  }
  0x14   :  { %493 = vmatprep.subr.bf16.mxu0 %v672_v10  ;;  %v610_v20 = vpack.c.bf16 %v256_v19, %v255_v18  ;;  %v257_v22 = vld [vmem:[%s937_s3 + $0x10] sm:$0xff]  ;;  %v258_v23 = vld [vmem:[%s937_s3 + $0x18] sm:$0xff]  ;;  %v259_v25 = vld [vmem:[%s937_s3 + $0x20] sm:$0xff]  ;;  %vm245_vm2 = vcmask 1041409   ;;  %vm349_vm3 = vcmask 1041408   ;;  %s709_s25 = smov [#allocation3]  }
  0x15   :  { %215 = vmatprep.mubr.bf16.mxu0 %v84_v16  ;;  %v613_v24 = vpack.c.bf16 %v258_v23, %v257_v22  ;;  %v260_v26 = vld [vmem:[%s937_s3 + $0x28] sm:$0xff]  ;;  %v261_v28 = vld [vmem:[%s937_s3 + $0x30] sm:$0xff]  ;;  %v262_v29 = vld [vmem:[%s937_s3 + $0x38] sm:$0xff]  ;;  %s456_s26 = sshll.u32 %s709_s25, 4  ;;  %s457_s26 = int_to_ptr.vmem [resolvable:$true] %s456_s26 }
  0x16   :  { %611 = vmatpush3.bf16.msra.mxu1 %v610_v20  ;;  %v616_v27 = vpack.c.bf16 %v260_v26, %v259_v25  ;;  %v619_v30 = vpack.c.bf16 %v262_v29, %v261_v28  ;;  %v263_v32 = vld [vmem:[%s937_s3 + $0x40] sm:$0xff]  ;;  %v264_v33 = vld [vmem:[%s937_s3 + $0x48] sm:$0xff]  ;;  %v265_v35 = vld [vmem:[%s937_s3 + $0x50] sm:$0xff]  ;;  %p687_p1 = scmp.lt.s32.totalorder %s457_s26, %s457_s26 }
  0x17   :  { %494 = vmatpush3.bf16.msra.mxu0 %v673_v11  ;;  %612 = vmatprep.subr.bf16.mxu1 %v706_v21  ;;  %v622_v34 = vpack.c.bf16 %v264_v33, %v263_v32  ;;  %v266_v36 = vld [vmem:[%s937_s3 + $0x58] sm:$0xff]  ;;  %v267_v38 = vld [vmem:[%s937_s3 + $0x60] sm:$0xff]  ;;  %v268_v39 = vld [vmem:[%s937_s3 + $0x68] sm:$0xff] }
  0x18   :  { %495 = vmatprep.subr.bf16.mxu0 %v674_v12  ;;  %v625_v37 = vpack.c.bf16 %v266_v36, %v265_v35  ;;  %v628_v40 = vpack.c.bf16 %v268_v39, %v267_v38  ;;  %v269_v41 = vld [vmem:[%s937_s3 + $0x70] sm:$0xff]  ;;  %v270_v42 = vld [vmem:[%s937_s3 + $0x78] sm:$0xff]  ;;  %v464_v45 = vld [vmem:[%s936_s2] ss:$0 sm:$0xff] }
  0x19   :  { %v631_v43 = vpack.c.bf16 %v270_v42, %v269_v41  ;;  %v356_v8 = vld [vmem:[%s939_s5] sm:$0xff]  ;;  %v357_v9 = vld [vmem:[%s939_s5 + $0x8] sm:$0xff]  ;;  %v358_v10 = vld [vmem:[%s939_s5 + $0x10] sm:$0xff] }
  0x1a   :  { %614 = vmatpush3.bf16.msra.mxu1 %v613_v24  ;;  %v224_v3 = vld [vmem:[#allocation2] sm:$0x3]  ;;  %v634_v11 = vpack.c.bf16 %v357_v9, %v356_v8  ;;  %v359_v12 = vld [vmem:[%s939_s5 + $0x18] sm:$0xff]  ;;  %v365_v28 = vld [vmem:[%s939_s5 + $0x48] sm:$0xff] }
  0x1b   :  { %496 = vmatpush3.bf16.msra.mxu0 %v675_v14  ;;  %615 = vmatprep.subr.bf16.mxu1 %v706_v21  ;;  %v360_v14 = vld [vmem:[%s939_s5 + $0x20] sm:$0xff]  ;;  %v363_v18 = vld [vmem:[%s939_s5 + $0x38] sm:$0xff]  ;;  %v370_v36 = vld [vmem:[%s939_s5 + $0x70] sm:$0xff] }
  0x1c   :  { %497 = vmatprep.subr.bf16.mxu0 %v676_v15  ;;  %v361_v15 = vld [vmem:[%s939_s5 + $0x28] sm:$0xff]  ;;  %v481_v20 = vld [vmem:[%s938_s4] ss:$0 sm:$0xff] }
  0x1d   :  { %v640_v16 = vpack.c.bf16 %v361_v15, %v360_v14  ;;  %v368_v33 = vld [vmem:[%s939_s5 + $0x60] sm:$0xff] }
  0x1e   :  { %617 = vmatpush3.bf16.msra.mxu1 %v616_v27  ;;  %v364_v27 = vld [vmem:[%s939_s5 + $0x40] sm:$0xff] }
  0x1f   :  { %498 = vmatpush3.bf16.msra.mxu0 %v677_v17  ;;  %618 = vmatprep.subr.bf16.mxu1 %v706_v21  ;;  %v362_v17 = vld [vmem:[%s939_s5 + $0x30] sm:$0xff]  ;;  %v646_v29 = vpack.c.bf16 %v365_v28, %v364_v27 }
  0x20   :  { %633 = vmatprep.subr.bf16.mxu0 %v706_v21  ;;  %v643_v19 = vpack.c.bf16 %v363_v18, %v362_v17 }
  0x22   :  { %216 = vmatmul.mubr.bf16.vlgmr.msra.gmra.mrb[0].mxu0 %v681_v13  ;;  %620 = vmatpush3.bf16.msra.mxu1 %v619_v30  ;;  %v637_v13 = vpack.c.bf16 %v359_v12, %v358_v10  ;;  %v366_v30 = vld [vmem:[%s939_s5 + $0x50] sm:$0xff] }
  0x23   :  { %621 = vmatprep.subr.bf16.mxu1 %v706_v21  ;;  %606 = vmatprep.mubr.msk.f32.mxu0 %vm708_vm0, %v707_v31  ;;  %v367_v31 = vld [vmem:[%s939_s5 + $0x58] sm:$0xff] }
  0x24   :  { %635 = vmatpush3.bf16.msra.mxu0 %v634_v11  ;;  %v649_v32 = vpack.c.bf16 %v367_v31, %v366_v30 }
  0x25   :  { %636 = vmatprep.subr.bf16.mxu0 %v706_v21 }
  0x26   :  { %623 = vmatpush3.bf16.msra.mxu1 %v622_v34  ;;  %v369_v34 = vld [vmem:[%s939_s5 + $0x68] sm:$0xff] }
  0x27   :  { %624 = vmatprep.subr.bf16.mxu1 %v706_v21  ;;  %v652_v35 = vpack.c.bf16 %v369_v34, %v368_v33 }
  0x28   :  { %638 = vmatpush3.bf16.msra.mxu0 %v637_v13 }
  0x29   :  { %639 = vmatprep.subr.bf16.mxu0 %v706_v21 }
  0x2a   :  { %626 = vmatpush3.bf16.msra.mxu1 %v625_v37  ;;  %v371_v37 = vld [vmem:[%s939_s5 + $0x78] sm:$0xff]  ;;  %s682_s5 = scalar_lea.vmem %s457_s26, 32 }
  0x2b   :  { %627 = vmatprep.subr.bf16.mxu1 %v706_v21  ;;  %v655_v38 = vpack.c.bf16 %v371_v37, %v370_v36  ;;  %p683_p0 = scmp.ne.s32.totalorder %s457_s26, %s682_s5  ;;  %p688_p2 = scmp.lt.s32.totalorder %s682_s5, %s682_s5 }
  0x2c   :  { %641 = vmatpush3.bf16.msra.mxu0 %v640_v16 }
  0x2d   :  { %642 = vmatprep.subr.bf16.mxu0 %v706_v21  ;;  %p689_p3 = por %p688_p2, %p687_p1 }
  0x2e   :  { %629 = vmatpush3.bf16.msra.mxu1 %v628_v40 }
  0x2f   :  { %630 = vmatprep.subr.bf16.mxu1 %v706_v21  ;;  %p690_p4 = pnand %p689_p3, %p683_p0 }
  0x30   :  { %644 = vmatpush3.bf16.msra.mxu0 %v643_v19 }
  0x31   :  { %645 = vmatprep.subr.bf16.mxu0 %v706_v21 }
  0x32   :  { %632 = vmatpush3.bf16.msra.mxu1 %v631_v43  ;;  %v482_v43 = vld [vmem:[%s940_s6] ss:$0 sm:$0xff] }
  0x34   :  { %647 = vmatpush3.bf16.msra.mxu0 %v646_v29 }
  0x35   :  { %648 = vmatprep.subr.bf16.mxu0 %v706_v21 }
  0x38   :  { %650 = vmatpush3.bf16.msra.mxu0 %v649_v32 }
  0x39   :  { %651 = vmatprep.subr.bf16.mxu0 %v706_v21 }
  0x3c   :  { %653 = vmatpush3.bf16.msra.mxu0 %v652_v35 }
  0x3d   :  { %654 = vmatprep.subr.bf16.mxu0 %v706_v21 }
  0x40   :  { %656 = vmatpush3.bf16.msra.mxu0 %v655_v38 }
  0xf5   :  { %v499_v44 = vpop.f32.mrb[0].mxu0 }
  0xf6   :  { %v500_v46 = vpop.f32.mrb[1].mxu0 }
  0xf7   :  { %v501_v47 = vadd.f32 %v500_v46, %v499_v44  ;;  %v502_v48 = vpop.f32.mrb[2].mxu0 }
  0xf8   :  { %v503_v49 = vpop.f32.mrb[3].mxu0 }
  0xf9   :  { %v218_v50 = vadd.f32 %v501_v47, %v464_v45 }
  0xfb   :  { %v223_v51 = vmax.f32 %v218_v50, 0.0 }
  0xfd   :  { %v226_v52 = vcombine.high %v223_v51, %v223_v51  ;;  %v229_v53 = vsel %vm228_vm1, %v223_v51, 0.0 }
  0xfe   :  { %v230_v54 = vrot.slane %v229_v53, 4 }
  0xff   :  { %v236_v55 = vsel %vm228_vm1, %v226_v52, 0.0 }
 0x100   :  { %v231_v56 = vadd.f32 %v230_v54, %v229_v53  ;;  %v237_v57 = vrot.slane %v236_v55, 4 }
 0x102   :  { %v232_v58 = vrot.slane %v231_v56, 2  ;;  %v238_v59 = vadd.f32 %v237_v57, %v236_v55 }
 0x104   :  { %v233_v60 = vadd.f32 %v232_v58, %v231_v56  ;;  %v239_v61 = vrot.slane %v238_v59, 2 }
 0x106   :  { %v234_v62 = vrot.slane %v233_v60, 1  ;;  %v240_v63 = vadd.f32 %v239_v61, %v238_v59 }
 0x108   :  { %v241_v0 = vrot.slane %v240_v63, 1  ;;  %v235_v1 = vadd.f32 %v234_v62, %v233_v60 }
 0x10a   :  { %v242_v2 = vadd.f32 %v241_v0, %v240_v63 }
 0x10c   :  { %v246_v4 = vsel %vm245_vm2, %v242_v2, %v235_v1 }
 0x10d   :  { %v248_v5 = vadd.f32 %v246_v4, %v224_v3 }
 0x10f   :  { %249 = vst [vmem:[#allocation2] sm:$0x3] %v248_v5 }
 0x116   :  { %v253_v6 = vld [vmem:[#allocation2] sm:$0x3] }
 0x117   :  { %v254_v7 = vmul.f32 0.25, %v253_v6 }
 0x119   :  { %572 = vmatmul.mubr.f32.vlgmr.msra.gmra.mrb[0].mxu1 %v254_v7 }
 0x1ec   :  { %v344_v22 = vpop.f32.mrb[0].mxu1 }
 0x1ed   :  { %v345_v23 = vadd.f32 %v481_v20, %v344_v22  ;;  %v573_v24 = vpop.f32.mrb[1].mxu1 }
 0x1ef   :  { %v348_v25 = vmul.f32 %v345_v23, %v345_v23 }
 0x1f1   :  { %v350_v26 = vsel %vm349_vm3, %v348_v25, 0.0 }
 0x1f2   :  { %351 = vadd.xlane.f32.xlu0 %v350_v26 }
 0x27f   :  { %v352_v39 = vpop.xlane.xlu0 %351 }
 0x280   :  { %v353_v40 = vmax.f32 %v352_v39, 1e-24 }
 0x282   :  { %679 = vrsqrt.f32 %v353_v40 }
 0x28c   :  { %v680_v41 = vpop.eup %679 }
 0x28d   :  { %v355_v42 = vmul.f32 %v680_v41, %v345_v23 }
 0x28f   :  { %607 = vmatmul.mubr.f32.vlgmr.msra.gmra.mrb[4].mxu0 %v355_v42 }
 0x362   :  { %v445_v44 = vpop.f32.mrb[4].mxu0 }
 0x363   :  { %v446_v45 = vadd.f32 %v482_v43, %v445_v44  ;;  %v608_v46 = vpop.f32.mrb[5].mxu0 }
 0x365   :  { %449 = vst [vmem:[#allocation3] sm:$0x3] %v446_v45 }
 0x366   :  { %693 = shalt.err (!%p690_p4)
}
 0x367   :  { %s694_s29 = scalar_lea.hbm %s941_s7, 32 }
 0x368   :  { %p695_p5 = scmp.ne.s32.totalorder %s941_s7, %s694_s29  ;;  %p698_p6 = scmp.lt.u32.totalorder %s694_s29, %s941_s7 }
 0x36a   :  { %p700_p7 = pnand %p698_p6, %p695_p5 }
 0x36c   :  { %703 = shalt.err (!%p700_p7)
}
 0x36d   :  { %459 = dma.vmem_to_hbm [thread:$0]  %s457_s26, 32, %s941_s7, [#allocation4]  }
 0x36e   :  { %704 = dma.done.wait [#allocation4], 32  }
 0x36f   :  { %705 = vsyncadd [#allocation4], 4294967264 }
 0x370   :  { %463 = vsyncpa [#allocation4], 1 }

</bundles_post_ra>
